<compile_context>
chip_gen: v5e
topology: v5e:2x2
jax: 0.10.0
libtpu: 0.0.40
codegen_flags: <defaults>
</compile_context>

<pallas_src>
import numpy as np
import jax
import jax.numpy as jnp
from jax.experimental import pallas as pl
from jax.experimental.pallas import tpu as pltpu


# --------------------------- kernel 1: cost matrix --------------------------
def _cost_kernel(im_ref, s_ref, out_ref):
    # im_ref: (n_region, dim) bf16   s_ref: (bs*n_word, dim) bf16
    # out_ref: (n_region, bs*n_word) f32
    dot = jax.lax.dot_general(
        im_ref[...], s_ref[...],
        dimension_numbers=(((1,), (1,)), ((), ())),      # im @ s_all.T on the MXU
        preferred_element_type=jnp.float32)
    out_ref[...] = (1.0 - jnp.maximum(dot, 0.0)).astype(out_ref.dtype)


def emd_cost_matrix(im, s):
    """cost_rows[i, r, j*W + w] = 1 - relu(<im[i, r], s[j, w]>).

    One large matmul per image (grid=(bs,)) instead of bs^2 tiny ones; bf16
    operands, f32 (Sinkhorn-facing) output."""
    bs, n_region, dim = im.shape
    n_word = s.shape[1]
    im_bf = im.astype(jnp.bfloat16)
    s_flat = s.reshape(bs * n_word, dim).astype(jnp.bfloat16)
    return pl.pallas_call(
        _cost_kernel,
        out_shape=jax.ShapeDtypeStruct((bs, n_region, bs * n_word), jnp.float32),
        grid=(bs,),
        in_specs=[
            pl.BlockSpec((None, n_region, dim), lambda i: (i, 0, 0)),
            pl.BlockSpec((bs * n_word, dim), lambda i: (0, 0)),
        ],
        out_specs=pl.BlockSpec((None, n_region, bs * n_word), lambda i: (i, 0, 0)),
        compiler_params=pltpu.CompilerParams(dimension_semantics=("parallel",)),
    )(im_bf, s_flat)


# ----------------------- kernel 2: EMD score matrix -------------------------
def _score_kernel(cost_ref, flow_ref, score_ref):
    # cost_ref/flow_ref: (TI, bs, R*W) bf16 ;  score_ref: (TI, bs) f32
    prod = cost_ref[...].astype(jnp.float32) * flow_ref[...].astype(jnp.float32)
    score_ref[...] = -jnp.sum(prod, axis=-1)             # f32 accumulation, 128-lane reduce


def emd_score_matrix(cost_bf, flow_bf):
    """emd_score[i, j] = -sum_rw cost[i, j, rw] * flow[i, j, rw].

    Lane-dense (R*W) last dim, bf16 inputs (f32 accumulate), TI image rows per
    grid step, "parallel" grid axis so v7x can split it over both TCs."""
    bs, _, rw = cost_bf.shape
    ti = 8 if bs % 8 == 0 else bs                         # rows of `score` per step
    return pl.pallas_call(
        _score_kernel,
        out_shape=jax.ShapeDtypeStruct((bs, bs), jnp.float32),
        grid=(bs // ti,),
        in_specs=[
            pl.BlockSpec((ti, bs, rw), lambda i: (i, 0, 0)),
            pl.BlockSpec((ti, bs, rw), lambda i: (i, 0, 0)),
        ],
        out_specs=pl.BlockSpec((ti, bs), lambda i: (i, 0)),
        compiler_params=pltpu.CompilerParams(dimension_semantics=("parallel",)),
    )(cost_bf, flow_bf)


# ------------------- kernel 3: triplet (semi-)HNM reduction -----------------
def _make_triplet_kernel(bs):
    inv_bs = 1.0 / bs

    def kernel(margin_ref, score_ref, semi_ref, full_ref):
        score = score_ref[...]                            # (bs, bs) f32
        margin = margin_ref[0]                            # SMEM scalar
        rows = jax.lax.broadcasted_iota(jnp.int32, (bs, bs), 0)
        cols = jax.lax.broadcasted_iota(jnp.int32, (bs, bs), 1)
        eye = rows == cols
        diag = jnp.where(eye, score, 0.0)
        d1 = jnp.sum(diag, axis=1, keepdims=True)         # (bs, 1): score[i, i]
        d2 = jnp.sum(diag, axis=0, keepdims=True)         # (1, bs): score[j, j]
        cost_s = jnp.maximum(margin + score - d1, 0.0)
        cost_im = jnp.maximum(margin + score - d2, 0.0)
        cost_s = jnp.where(eye, 0.0, cost_s)
        cost_im = jnp.where(eye, 0.0, cost_im)
        semi_s = jnp.where(score > d1, 0.0, cost_s)
        semi_im = jnp.where(score > d2, 0.0, cost_im)
        semi_ref[...] = (
            jnp.sum(jnp.max(semi_s, axis=1, keepdims=True), keepdims=True)
            + jnp.sum(jnp.max(semi_im, axis=0, keepdims=True), keepdims=True)
        ) * inv_bs
        full_ref[...] = (
            jnp.sum(jnp.max(cost_s, axis=1, keepdims=True), keepdims=True)
            + jnp.sum(jnp.max(cost_im, axis=0, keepdims=True), keepdims=True)
        ) * inv_bs

    return kernel


def triplet_loss_from_score(score, margin):
    bs = score.shape[0]
    margin_arr = jnp.full((1,), margin, jnp.float32)
    semi, full = pl.pallas_call(
        _make_triplet_kernel(bs),
        out_shape=(jax.ShapeDtypeStruct((1, 1), jnp.float32),
                   jax.ShapeDtypeStruct((1, 1), jnp.float32)),
        in_specs=[
            pl.BlockSpec(memory_space=pltpu.MemorySpace.SMEM),
            pl.BlockSpec(memory_space=pltpu.MemorySpace.VMEM),
        ],
        out_specs=(pl.BlockSpec(memory_space=pltpu.MemorySpace.VMEM),
                   pl.BlockSpec(memory_space=pltpu.MemorySpace.VMEM)),
    )(margin_arr, score)
    return semi[0, 0], full[0, 0]


# ------------------------ on-device glue (no host trip) ---------------------
def _tri_weight_table(n):
    """Row k (0..n): 1/k on the first k columns, 0 elsewhere.
    Matches torch.tril((1/arange(n+1)).view(-1,1).repeat(1,n), diagonal=-1)."""
    k = jnp.arange(n + 1, dtype=jnp.float32)[:, None]     # (n+1, 1)
    col = jnp.arange(n, dtype=jnp.float32)[None, :]       # (1, n)
    return jnp.where(col < k, 1.0 / jnp.maximum(k, 1.0), 0.0)


def device_emd_flow(cost4, w_im, w_txt, eps=0.05, iters=300):
    """Per-pair optimal-transport plan with marginals (w_im[i], w_txt[j]).
    On-device JAX Sinkhorn solver; cost/flow never leave HBM.
    # TODO(synk): stands in for emd_inference_opencv_test (cv2.EMD exact LP),
    #             which has no Pallas/TPU equivalent."""
    bs, _, n_region, n_word = cost4.shape
    K = jnp.exp(-cost4 / eps)                             # (bs, bs, R, W)
    a = jnp.broadcast_to(w_im[:, None, :], (bs, bs, n_region))
    b = jnp.broadcast_to(w_txt[None, :, :], (bs, bs, n_word))

    def body(_, uv):
        u, v = uv
        Kv = jnp.einsum("ijrw,ijw->ijr", K, v)
        u = jnp.where(a > 0, a / jnp.maximum(Kv, 1e-30), 0.0)
        Ku = jnp.einsum("ijrw,ijr->ijw", K, u)
        v = jnp.where(b > 0, b / jnp.maximum(Ku, 1e-30), 0.0)
        return (u, v)

    u, v = jax.lax.fori_loop(0, iters, body, (jnp.ones_like(a), jnp.ones_like(b)))
    return u[..., :, None] * K * v[..., None, :]          # (bs, bs, R, W)


def emd_loss_forward(im, s, s_l, k_part, margin=0.0):
    """EMDLoss.forward(im, s, s_l, k_part) -> (semi_hnm_loss, hnm_loss).
    im, s must be L2-normalized along the feature axis (module contract).
    NOTE: cost is unmasked for invalid regions/words; this matches torch because
    the flow is zero there (zero marginals), but the raw cost entries for those
    slots are not meaningful on their own."""
    bs, n_region, _ = im.shape
    n_word = s.shape[1]
    cost_rows = emd_cost_matrix(im, s)                                   # Pallas (MXU)
    cost4 = cost_rows.reshape(bs, n_region, bs, n_word).transpose(0, 2, 1, 3)
    w_im = _tri_weight_table(n_region)[jnp.asarray(k_part)]             # (bs, R)
    w_txt = _tri_weight_table(n_word)[jnp.asarray(s_l)]                 # (bs, W)
    flow4 = device_emd_flow(cost4, w_im, w_txt)                         # on-device OT
    rw = n_region * n_word
    cost_bf = cost4.reshape(bs, bs, rw).astype(jnp.bfloat16)            # lane-dense + bf16
    flow_bf = flow4.reshape(bs, bs, rw).astype(jnp.bfloat16)
    score = emd_score_matrix(cost_bf, flow_bf)                          # Pallas (streaming)
    return triplet_loss_from_score(score, margin)                       # Pallas (reduction)


# --------------------------- pure-NumPy reference ---------------------------
def ref_triplet_loss(cost, flow, margin):
    cost = np.asarray(cost, np.float64)
    flow = np.asarray(flow, np.float64)
    bs = cost.shape[0]
    score = -(cost * flow).sum(axis=(2, 3))               # (bs, bs)
    d = np.diag(score)
    d1 = d[:, None]
    d2 = d[None, :]
    cost_s = np.maximum(margin + score - d1, 0.0)
    cost_im = np.maximum(margin + score - d2, 0.0)
    eye = np.eye(bs, dtype=bool)
    cost_s[eye] = 0.0
    cost_im[eye] = 0.0
    semi_s = np.where(score > d1, 0.0, cost_s)
    semi_im = np.where(score > d2, 0.0, cost_im)
    return (semi_s.max(1).mean() + semi_im.max(0).mean(),
            cost_s.max(1).mean() + cost_im.max(0).mean(),
            score)


if __name__ == "__main__":
    # Small shapes consistent with the module: batch=4 image/sentence pairs,
    # n_region=16 image parts, n_word=8 words, embedding dim=32, margin=0.2.
    bs, n_region, n_word, dim = 4, 16, 8, 32
    margin = 0.2

    key = jax.random.PRNGKey(0)
    k_im, k_s = jax.random.split(key)
    im = jax.random.normal(k_im, (bs, n_region, dim), jnp.float32)
    s = jax.random.normal(k_s, (bs, n_word, dim), jnp.float32)
    # module contract: "norm im, s before this function"
    im = im / (jnp.linalg.norm(im, axis=-1, keepdims=True) + 1e-8)
    s = s / (jnp.linalg.norm(s, axis=-1, keepdims=True) + 1e-8)
    k_part = jnp.array([16, 9, 12, 5], jnp.int32)   # valid regions per image  (<= n_region)
    s_l = jnp.array([8, 6, 4, 7], jnp.int32)        # valid words per sentence (<= n_word)

    # ---- kernel 1: pairwise cost matrix (reference uses same bf16 operands) --
    cost_rows = jax.block_until_ready(emd_cost_matrix(im, s))           # (bs, R, bs*W)
    im_np = np.asarray(im.astype(jnp.bfloat16).astype(jnp.float32), np.float64)
    s_np = np.asarray(s.astype(jnp.bfloat16).astype(jnp.float32), np.float64)
    cost_ref4 = 1.0 - np.maximum(np.einsum("ird,jwd->ijrw", im_np, s_np), 0.0)
    cost_k4 = (np.asarray(cost_rows, np.float64)
               .reshape(bs, n_region, bs, n_word).transpose(0, 2, 1, 3))
    err_cost = float(np.max(np.abs(cost_k4 - cost_ref4)))
    assert err_cost < 1e-3, f"cost matrix mismatch: max abs err = {err_cost}"

    # ---- on-device OT flow (shared by kernel path and reference) -------------
    cost4 = cost_rows.reshape(bs, n_region, bs, n_word).transpose(0, 2, 1, 3)
    w_im = _tri_weight_table(n_region)[k_part]
    w_txt = _tri_weight_table(n_word)[s_l]
    flow4 = jax.block_until_ready(device_emd_flow(cost4, w_im, w_txt))

    rw = n_region * n_word
    cost_bf = cost4.reshape(bs, bs, rw).astype(jnp.bfloat16)
    flow_bf = flow4.reshape(bs, bs, rw).astype(jnp.bfloat16)

    # ---- kernel 2: EMD score matrix ------------------------------------------
    score = jax.block_until_ready(emd_score_matrix(cost_bf, flow_bf))
    c_np = np.asarray(cost_bf.astype(jnp.float32), np.float64).reshape(bs, bs, n_region, n_word)
    f_np = np.asarray(flow_bf.astype(jnp.float32), np.float64).reshape(bs, bs, n_region, n_word)
    semi_ref, full_ref, score_ref = ref_triplet_loss(c_np, f_np, margin)
    err_score = float(np.max(np.abs(np.asarray(score, np.float64) - score_ref)))
    assert err_score < 1e-4, f"score matrix mismatch: max abs err = {err_score}"

    # ---- kernel 3: triplet / semi-HNM reduction -------------------------------
    semi, full = triplet_loss_from_score(score, margin)
    semi = float(jax.block_until_ready(semi))
    full = float(full)
    err_loss = max(abs(semi - semi_ref), abs(full - full_ref))
    assert err_loss < 1e-4, (
        f"loss mismatch: pallas=({semi}, {full}) ref=({semi_ref}, {full_ref})")

    # ---- end-to-end module-equivalent call ------------------------------------
    semi_e2e, full_e2e = emd_loss_forward(im, s, s_l, k_part, margin=margin)
    jax.block_until_ready((semi_e2e, full_e2e))

    print("KERNEL_OK")
</pallas_src>

<mosaic_0001>
module attributes {stable_mosaic.version = 11 : i64} {
  func.func @_cost_kernel(%arg0: i32, %arg1: memref<1x16x32xbf16, #tpu.memory_space<vmem>>, %arg2: memref<32x32xbf16, #tpu.memory_space<vmem>>, %arg3: memref<1x16x32xf32, #tpu.memory_space<vmem>>) attributes {dimension_semantics = [#tpu.dimension_semantics<parallel>], iteration_bounds = array<i64: 4>, scalar_prefetch = 0 : i64, scratch_operands = 0 : i64, tpu.core_type = #tpu.core_type<tc>, window_params = [{transform_indices = @transform_0, window_bounds = array<i64: 1, 16, 32>}, {pipeline_mode = #tpu.pipeline_mode<synchronous>, transform_indices = @transform_1, window_bounds = array<i64: 32, 32>}, {transform_indices = @transform_2, window_bounds = array<i64: 1, 16, 32>}]} {
    %c0 = arith.constant 0 : index
    %c0_0 = arith.constant 0 : index
    %c0_1 = arith.constant 0 : index
    %0 = vector.load %arg1[%c0, %c0_0, %c0_1] : memref<1x16x32xbf16, #tpu.memory_space<vmem>>, vector<1x16x32xbf16>
    %1 = vector.shape_cast %0 : vector<1x16x32xbf16> to vector<16x32xbf16>
    %c0_2 = arith.constant 0 : index
    %c0_3 = arith.constant 0 : index
    %2 = vector.load %arg2[%c0_2, %c0_3] : memref<32x32xbf16, #tpu.memory_space<vmem>>, vector<32x32xbf16>
    %cst = arith.constant dense<0.000000e+00> : vector<16x32xf32>
    %3 = tpu.matmul %1, %2, %cst {dimension_numbers = #tpu.dot_dimension_numbers<[1], [1], [0], [0], [0, 0, 1, 0], [], []>} : vector<16x32xbf16>, vector<32x32xbf16>, vector<16x32xf32> -> vector<16x32xf32>
    %cst_4 = arith.constant 0.000000e+00 : f32
    %4 = vector.broadcast %cst_4 : f32 to vector<16x32xf32>
    %5 = arith.maximumf %3, %4 : vector<16x32xf32>
    %cst_5 = arith.constant 1.000000e+00 : f32
    %6 = vector.broadcast %cst_5 : f32 to vector<16x32xf32>
    %7 = arith.subf %6, %5 : vector<16x32xf32>
    %c0_6 = arith.constant 0 : index
    %c0_7 = arith.constant 0 : index
    %c0_8 = arith.constant 0 : index
    %8 = vector.load %arg3[%c0_6, %c0_7, %c0_8] : memref<1x16x32xf32, #tpu.memory_space<vmem>>, vector<1x16x32xf32>
    %9 = vector.shape_cast %8 : vector<1x16x32xf32> to vector<16x32xf32>
    %10 = vector.shape_cast %7 : vector<16x32xf32> to vector<1x16x32xf32>
    tpu.vector_store %arg3[%c0_6, %c0_7, %c0_8], %10 {strides = array<i32>} : memref<1x16x32xf32, #tpu.memory_space<vmem>>, vector<1x16x32xf32>,
    return
  }
  func.func @transform_0(%arg0: i32) -> (i32, i32, i32) {
    %c0_i32 = arith.constant 0 : i32
    %c0_i32_0 = arith.constant 0 : i32
    %c0_i32_1 = arith.constant 0 : i32
    return %arg0, %c0_i32, %c0_i32_0 : i32, i32, i32
  }
  func.func @transform_1(%arg0: i32) -> (i32, i32) {
    %c0_i32 = arith.constant 0 : i32
    %c0_i32_0 = arith.constant 0 : i32
    %c0_i32_1 = arith.constant 0 : i32
    return %c0_i32, %c0_i32_0 : i32, i32
  }
  func.func @transform_2(%arg0: i32) -> (i32, i32, i32) {
    %c0_i32 = arith.constant 0 : i32
    %c0_i32_0 = arith.constant 0 : i32
    %c0_i32_1 = arith.constant 0 : i32
    return %arg0, %c0_i32, %c0_i32_0 : i32, i32, i32
  }
}

</mosaic_0001>

<bundles_post_ra>
// kernel: tpu_custom_call.1
= control target key start
LH: loop header
LB: loop body
LE: loop exit
PB: predicated region body
PF: predicated region fallthrough
CT: control target
= control target key end

     0   :  { %7 = vsyncpa [#allocation3], 0  ;;  %s727_s0 = inlined_call_operand.hbm [shape: bf16[4,16,32], index: 0, kind: input, shape index: {}]   ;;  %s728_s1 = inlined_call_operand.hbm [shape: bf16[32,32], index: 1, kind: input, shape index: {}]   ;;  %s729_s2 = inlined_call_operand.hbm [shape: f32[4,16,32], index: 2, kind: output, shape index: {}]  }
   0x1   :  { %9 = vsyncpa [#allocation3 + $0x1], 0 }
   0x2   :  { %10 = vsyncpa [#allocation6], 0 }
   0x3   :  { %11 = vsyncpa [#allocation4], 0 }
   0x4   :  { %13 = vsyncpa [#allocation4 + $0x1], 0  ;;  %s579_s9 = smov 0   ;;  %s581_s10 = smov 0  }
   0x5   :  { %s583_s11 = smov 0   ;;  %s585_s12 = smov 0  }
   0x6 LB: > { %s600_s13 = sadd.s32 4294967295, %s557_s12   ;;  %s332_s14 = sadd.s32 4294967294, %s557_s12   ;;  %s557_s12 = sphi %s585_s12, %s738_s12   ;;  %s553_s11 = sphi %s583_s11, %s737_s11   ;;  %s549_s10 = sphi %s581_s10, %s736_s10   ;;  %s545_s9 = sphi %s579_s9, %s735_s9  }
   0x7   : > { %p39_p0 = scmp.ne.s32.totalorder %s549_s10, %s545_s9  ;;  %p40_p1 = scmp.eq.s32.totalorder %s600_s13, 0 }
   0x8   : > { %p84_p2 = scmp.eq.s32.totalorder %s600_s13, 3  ;;  %p90_p3 = scmp.eq.s32.totalorder %s332_s14, 3 }
   0x9   : > { %p609_p4 = por %p40_p1, %p39_p0  ;;  %p333_p5 = scmp.ge.s32.totalorder %s557_s12, 1 }
   0xa   : > { %p614_p6 = por %p90_p3, %p39_p0  ;;  %p97_p7 = scmp.lt.s32.totalorder %s557_s12, 5 }
   0xb   : > { %s108_s19 = sshll.u32 %s728_s1, 4  ;;  %s559_s21 = smov [#allocation5]   ;;  %s109_s19 = int_to_ptr.hbm [resolvable:$true] %s108_s19 }
   0xc   : > { %p622_p8 = pnand %p333_p5, %p97_p7  ;;  %s110_s22 = sshll.u32 %s559_s21, 4  ;;  %s111_s22 = int_to_ptr.vmem [resolvable:$true] %s110_s22 }
   0xd   : > { %s631_s23 = sadd.s32 1, %s557_s12   ;;  %s560_s24 = smov 64  }
   0xe   : > { %p374_p9 = pneg %p622_p8  ;;  %s561_s25 = smov 4  }
   0xf   : > { %s23_s26 = ssub.s32 %s557_s12, %s631_s23  ;;  %s26_s27 = sadd.s32 1, %s553_s11 }
  0x10   : > { %p375_p10 = pnand %p374_p9, %p40_p1  ;;  %p24_p11 = scmp.eq.s32.totalorder %s23_s26, 0 }
  0x11   : > { %p33_p12 = scmp.ne.s32.totalorder %s553_s11, %s549_s10  ;;  %p34_p13 = scmp.eq.s32.totalorder %s557_s12, 0 }
  0x12   : > { %377 = dma.hbm_to_vmem [thread:$0]  (!%p375_p10), %s109_s19, 256, %s111_s22, [#allocation6], %s560_s24, %s560_s24, %s561_s25  }
  0x13   : > { %s643_s28 = scalar_select %p24_p11, %s553_s11, %s26_s27  }
  0x14   : > { %p647_p0 = por %p84_p2, %p33_p12  ;;  %p387_p3 = scmp.lt.s32.totalorder %s557_s12, 4 }
  0x15   : > { %s124_s30 = sand.u32 1, %s553_s11   ;;  %s361_s3 = sshll.u32 %s557_s12, 3 }
  0x16   : > { %p35_p5 = por %p34_p13, %p33_p12  ;;  %s336_s4 = sshll.u32 %s124_s30, 3 }
  0x17   : > { %s133_s7 = scalar_lea.hbm %s727_s0, %s361_s3  ;;  %s128_s14 = scalar_lea.vmem [#allocation2], %s336_s4 }
  0x18   : > { %s134_s8 = sshll.u32 %s133_s7, 4  ;;  %s136_s17 = sshll.u32 %s128_s14, 4  ;;  %s135_s8 = int_to_ptr.hbm [resolvable:$true] %s134_s8  ;;  %s137_s17 = int_to_ptr.vmem [resolvable:$true] %s136_s17 }
  0x19   : > { %p657_p7 = pnand %p387_p3, %p35_p5  ;;  %s125_s19 = scalar_lea.sflag [#allocation3], %s124_s30 }
  0x1a   : > { %s457_s21 = sshra.s32 %s135_s8, 4  ;;  %s464_s3 = scalar_lea.hbm %s727_s0, 32  ;;  %s458_s21 = int_to_ptr.hbm [resolvable:$true] %s457_s21 }
  0x1b   : > { %s459_s22 = scalar_lea.hbm %s458_s21, 8  ;;  %p461_p9 = pneg %p657_p7 }
  0x1c   : > { %p460_p2 = scmp.ne.s32.totalorder %s458_s21, %s459_s22  ;;  %p465_p12 = scmp.lt.s32.totalorder %s458_s21, %s727_s0 }
  0x1d   : > { %p466_p13 = scmp.lt.s32.totalorder %s464_s3, %s459_s22 }
  0x1e   : > { %p462_p10 = pnand %p461_p9, %p460_p2 }
  0x1f   : > { %p467_p3 = por %p466_p13, %p465_p12 }
  0x20   : > { %p463_p11 = pneg %p462_p10 }
  0x22   : > { %p468_p5 = pnand %p467_p3, %p463_p11 }
  0x24   : > { %471 = shalt.err (!%p468_p5)
}
  0x25   : > { %381 = dma.hbm_to_vmem [thread:$0]  (!%p657_p7), %s135_s8, 128, %s137_s17, %s125_s19, %s560_s24, %s560_s24, %s561_s25  }
  0x26   : > { %148 = sbr.rel (%p622_p8) target bundleno = 205 (0xcd), region = 28  ;;  %s677_s30 = sand.u32 (!%p622_p8), 1, %s549_s10  }
  0x27   : > { %s340_s6 = sshll.u32 (!%p622_p8), %s677_s30, 3  ;;  %s151_s7 = scalar_lea.sflag (!%p622_p8), [#allocation3], %s677_s30 }
  0x28   : > { %s154_s14 = scalar_lea.vmem (!%p622_p8), [#allocation2], %s340_s6 }
  0x2b   : > { %532 = dma.done.wait (%p609_p4), %s151_s7, 128  }
  0x2c   : > { %534 = vsyncadd (%p609_p4), %s151_s7, 4294967168 }
  0x2d   : > { %536 = dma.done.wait (%p40_p1), [#allocation6], 256  }
  0x2e   : > { %538 = vsyncadd (%p40_p1), [#allocation6], 4294967040  ;;  %vm203_vm0 = vcmask 261120   ;;  %v364_v0 = vld [vmem:[#allocation5 + $0x8] sm:$0xff]  ;;  %v363_v2 = vld [vmem:[#allocation5] sm:$0xff]  ;;  %s342_s15 = sshll.u32 %s677_s30, 4 }
  0x2f   : > { %v211_v1 = vsel %vm203_vm0, %v364_v0, 0  ;;  %v208_v3 = vsel %vm203_vm0, %v363_v2, 0  ;;  %v362_v4 = vld [vmem:[%s154_s14] sm:$0xff]  ;;  %s365_s20 = sshll.u32 %s600_s13, 4  ;;  %s180_s17 = scalar_lea.vmem [#allocation7], %s342_s15 }
  0x30   : > { %219 = vmatpush.bf16.xpose.msra.mxu0 %v211_v1  ;;  %s245_s8 = scalar_lea.hbm %s729_s2, %s365_s20  ;;  %s246_s18 = sshll.u32 %s180_s17, 4  ;;  %s247_s18 = int_to_ptr.vmem [resolvable:$true] %s246_s18 }
  0x31   : > { %s248_s19 = sshll.u32 %s245_s8, 4  ;;  %s234_s21 = scalar_lea.sflag [#allocation4], %s677_s30  ;;  %s249_s19 = int_to_ptr.hbm [resolvable:$true] %s248_s19 }
  0x32   : > { %s501_s13 = sshra.s32 %s249_s19, 4  ;;  %s507_s3 = scalar_lea.hbm %s729_s2, 64  ;;  %s502_s13 = int_to_ptr.hbm [resolvable:$true] %s501_s13 }
  0x33   : > { %s503_s22 = scalar_lea.hbm %s502_s13, 16  ;;  %p508_p7 = scmp.lt.s32.totalorder %s502_s13, %s729_s2 }
  0x34   : > { %p504_p1 = scmp.ne.s32.totalorder %s502_s13, %s503_s22  ;;  %p509_p2 = scmp.lt.s32.totalorder %s507_s3, %s503_s22 }
  0x36   : > { %p505_p4 = pnand %p504_p1, %p647_p0  ;;  %p510_p9 = por %p509_p2, %p508_p7 }
  0x38   : > { %220 = vmatpush.bf16.xpose.msra.mxu0 %v208_v3  ;;  %p506_p8 = pneg %p505_p4 }
  0x3a   : > { %p511_p10 = pnand %p510_p9, %p506_p8 }
  0x3f   : > { %355 = vmatmul.msk.bf16.vlgmr.msra.gmra.mxu0 %vm203_vm0, %v362_v4 }
  0xbc   : > { %v222_v5 = vpop.f32.mrf.mxu0 }
  0xbd   : > { %v227_v6 = vmax.f32 %v222_v5, 0.0 }
  0xbf   : > { %v229_v7 = vsub.f32 1.0, %v227_v6 }
  0xc1   : > { %231 = vst.msk [vmem:[%s180_s17] sm:$0xff] %vm203_vm0, %v229_v7 }
  0xc4   : > { %v224_v8 = vpop.f32.mrf.mxu0 }
  0xc5   : > { %v228_v9 = vmax.f32 %v224_v8, 0.0 }
  0xc7   : > { %v230_v10 = vsub.f32 1.0, %v228_v9 }
  0xc9   : > { %232 = vst.msk [vmem:[%s180_s17 + $0x8] sm:$0xff] %vm203_vm0, %v230_v10 }
  0xca   : > { %514 = shalt.err (!%p511_p10)
}
  0xcb   : > { %s562_s30 = smov 128   ;;  %s563_s6 = smov 8  }
  0xcc   : > { %372 = dma.vmem_to_hbm [thread:$0]  (%p647_p0), %s247_s18, 256, %s249_s19, %s234_s21, %s562_s30, %s562_s30, %s563_s6  }
  0xcd PF: > { %p389_p11 = scmp.ge.s32.totalorder %s557_s12, 2  ;;  %s263_s7 = sand.u32 1, %s545_s9  }
  0xce   : > { %s264_s14 = scalar_lea.sflag [#allocation4], %s263_s7 }
  0xcf   : > { %p383_p12 = pnand %p389_p11, %p614_p6 }
  0xd1   : > { %p384_p13 = pneg %p383_p12 }
  0xd3   : > { %540 = dma.done.wait (%p384_p13), %s264_s14, 256  }
  0xd4   : > { %542 = vsyncadd (%p384_p13), %s264_s14, 4294967040  ;;  %p16_p3 = scmp.ge.s32.totalorder %s631_s23, 6   ;;  %s735_s9 = smov %s549_s10 }
  0xd5   : > { %s736_s10 = smov %s553_s11  ;;  %s737_s11 = smov %s643_s28 }
  0xd6   : > { %s738_s12 = smov %s631_s23  ;;  %18 = sbr.rel (!%p16_p3) target bundleno = 6 (0x6), region = 77 }
  0xdb   :  { %270 = vsyncpa [#allocation3], 1 }
  0xdc   :  { %272 = vsyncpa [#allocation3 + $0x1], 1 }
  0xdd   :  { %273 = vsyncpa [#allocation6], 1 }
  0xde   :  { %274 = vsyncpa [#allocation4], 1 }
  0xdf   :  { %276 = vsyncpa [#allocation4 + $0x1], 1 }

</bundles_post_ra>
